<compile_context>
chip_gen: v6e
topology: v6e:2x2x1
jax: 0.10.0
libtpu: 0.0.40
codegen_flags: <defaults>
</compile_context>

<pallas_src>
import jax
import jax.numpy as jnp
from jax.experimental import pallas as pl
from jax.experimental.pallas import tpu as pltpu


_MASK_VALUE = -1e32                  # same sentinel as the PyTorch reference
_VMEM_LIMIT = 32 * 1024 * 1024       # explicit scoped-VMEM budget (fits all gens)


def _round_up(x: int, m: int) -> int:
    return ((x + m - 1) // m) * m


def _pick_tile(total: int, candidates) -> int:
    """Largest candidate that evenly divides `total`, else full extent."""
    for t in candidates:
        if t <= total and total % t == 0:
            return t
    return total


# --------------------------------------------------------------------------
# Stage 1: fused Q/K/V linear projections over the flattened (B*N, D) rows.
# --------------------------------------------------------------------------
def _projection_kernel(q_ref, k_ref, v_ref,
                       wq_ref, bq_ref, wk_ref, bk_ref, wv_ref, bv_ref,
                       qw_ref, kw_ref, vw_ref):
    def proj(x_ref, w_ref, b_ref, o_ref):
        acc = jnp.dot(x_ref[...].astype(jnp.bfloat16), w_ref[...],
                      preferred_element_type=jnp.float32)          # MXU, f32 acc
        o_ref[...] = (acc + b_ref[...]).astype(o_ref.dtype)

    proj(q_ref, wq_ref, bq_ref, qw_ref)
    proj(k_ref, wk_ref, bk_ref, kw_ref)
    proj(v_ref, wv_ref, bv_ref, vw_ref)


# --------------------------------------------------------------------------
# Stage 2: flash-style attention with online softmax over KV tiles.
# --------------------------------------------------------------------------
def _make_flash_kernel(mask_mode: str, inv_scale: float):
    """mask_mode in {'none', '2d', '3d'}; inv_scale = 2 * d_k."""

    def kernel(*refs):
        if mask_mode == "none":
            qw_ref, kw_ref, vw_ref, o_ref, m_sc, l_sc, acc_sc = refs
        elif mask_mode == "2d":
            qm_ref, km_ref, qw_ref, kw_ref, vw_ref, o_ref, m_sc, l_sc, acc_sc = refs
        else:  # "3d"
            mk_ref, qw_ref, kw_ref, vw_ref, o_ref, m_sc, l_sc, acc_sc = refs

        ki = pl.program_id(2)

        @pl.when(ki == 0)
        def _init():
            m_sc[...] = jnp.full_like(m_sc, -3.0e38)
            l_sc[...] = jnp.zeros_like(l_sc)
            acc_sc[...] = jnp.zeros_like(acc_sc)

        # scores tile: contraction on d_k folded into the MXU operand
        # (no explicit XLU transpose, bf16 operands, f32 accumulation).
        s = jax.lax.dot_general(
            qw_ref[...], kw_ref[...],
            dimension_numbers=(((1,), (1,)), ((), ())),
            preferred_element_type=jnp.float32)                     # (tq, tk)

        if mask_mode == "2d":
            keep = (qm_ref[...] != 0.0) & (km_ref[...] != 0.0)      # (tq,1)&(1,tk)
            s = jnp.where(keep, s, _MASK_VALUE)
        elif mask_mode == "3d":
            s = jnp.where(mk_ref[...] != 0, s, _MASK_VALUE)

        # online softmax update
        m_prev = m_sc[...]
        m_new = jnp.maximum(m_prev, jnp.max(s, axis=-1, keepdims=True))
        alpha = jnp.exp(m_prev - m_new)
        p = jnp.exp(s - m_new)
        l_sc[...] = alpha * l_sc[...] + jnp.sum(p, axis=-1, keepdims=True)
        acc_sc[...] = alpha * acc_sc[...] + jnp.dot(
            p.astype(jnp.bfloat16), vw_ref[...],
            preferred_element_type=jnp.float32)
        m_sc[...] = m_new

        @pl.when(ki == pl.num_programs(2) - 1)
        def _finalize():
            # softmax normalization and the reference's /(2*d_k) fused into
            # one EUP reciprocal on the (tq, 1) denominator.
            inv = pl.reciprocal(l_sc[...] * inv_scale, approx=True)
            o_ref[...] = (acc_sc[...] * inv).astype(o_ref.dtype)

    return kernel


# --------------------------------------------------------------------------
# Wrapper
# --------------------------------------------------------------------------
def attention_forward(Q, K, V, params, mask=None):
    """Q, K, V: (B, N, d_model) f32. mask: None, (B, N) or (B, N, N)."""
    Wq, bq, Wk, bk, Wv, bv = params
    B, N, D = Q.shape
    d_k = int(Wq.shape[0])
    d_v = int(Wv.shape[0])
    dkp = _round_up(d_k, 128)       # lane-dense padded widths
    dvp = _round_up(d_v, 128)
    f32 = jnp.float32

    # --- glue: transpose + zero-pad weights/bias (numerics unchanged), bf16 weights ---
    WqT = jnp.zeros((D, dkp), f32).at[:, :d_k].set(Wq.T).astype(jnp.bfloat16)
    WkT = jnp.zeros((D, dkp), f32).at[:, :d_k].set(Wk.T).astype(jnp.bfloat16)
    WvT = jnp.zeros((D, dvp), f32).at[:, :d_v].set(Wv.T).astype(jnp.bfloat16)
    bq2 = jnp.zeros((1, dkp), f32).at[:, :d_k].set(bq.reshape(1, d_k))
    bk2 = jnp.zeros((1, dkp), f32).at[:, :d_k].set(bk.reshape(1, d_k))
    bv2 = jnp.zeros((1, dvp), f32).at[:, :d_v].set(bv.reshape(1, d_v))

    # ------------------------- stage 1: projections -------------------------
    M = B * N
    tm = _pick_tile(M, (512, 256, 128))
    Qf, Kf, Vf = Q.reshape(M, D), K.reshape(M, D), V.reshape(M, D)

    row_spec = pl.BlockSpec((tm, D), lambda i: (i, 0))

    def w_spec(cols):
        return pl.BlockSpec((D, cols), lambda i: (0, 0))

    def b_spec(cols):
        return pl.BlockSpec((1, cols), lambda i: (0, 0))

    QW, KW, VW = pl.pallas_call(
        _projection_kernel,
        out_shape=(jax.ShapeDtypeStruct((M, dkp), jnp.bfloat16),
                   jax.ShapeDtypeStruct((M, dkp), jnp.bfloat16),
                   jax.ShapeDtypeStruct((M, dvp), jnp.bfloat16)),
        grid_spec=pltpu.PrefetchScalarGridSpec(
            num_scalar_prefetch=0,
            grid=(M // tm,),
            in_specs=[row_spec, row_spec, row_spec,
                      w_spec(dkp), b_spec(dkp),
                      w_spec(dkp), b_spec(dkp),
                      w_spec(dvp), b_spec(dvp)],
            out_specs=(pl.BlockSpec((tm, dkp), lambda i: (i, 0)),
                       pl.BlockSpec((tm, dkp), lambda i: (i, 0)),
                       pl.BlockSpec((tm, dvp), lambda i: (i, 0)))),
        compiler_params=pltpu.CompilerParams(
            dimension_semantics=("parallel",),
            vmem_limit_bytes=_VMEM_LIMIT),
    )(Qf, Kf, Vf, WqT, bq2, WkT, bk2, WvT, bv2)

    QW = QW.reshape(B, N, dkp)
    KW = KW.reshape(B, N, dkp)
    VW = VW.reshape(B, N, dvp)

    # ------------------------- stage 2: attention ---------------------------
    tq = _pick_tile(N, (256, 128))
    tk = _pick_tile(N, (256, 128))
    nq, nkv = N // tq, N // tk

    qw_spec = pl.BlockSpec((None, tq, dkp), lambda b, qi, ki: (b, qi, 0))
    kw_spec = pl.BlockSpec((None, tk, dkp), lambda b, qi, ki: (b, ki, 0))
    vw_spec = pl.BlockSpec((None, tk, dvp), lambda b, qi, ki: (b, ki, 0))
    out_spec = pl.BlockSpec((None, tq, dvp), lambda b, qi, ki: (b, qi, 0))

    if mask is None:
        mask_mode, mask_inputs, mask_specs = "none", [], []
    elif mask.ndim == 2:
        mask_mode = "2d"
        mf = mask.astype(f32)
        mask_inputs = [mf.reshape(B, N, 1), mf.reshape(B, 1, N)]
        mask_specs = [
            pl.BlockSpec((None, tq, 1), lambda b, qi, ki: (b, qi, 0)),
            pl.BlockSpec((None, 1, tk), lambda b, qi, ki: (b, 0, ki)),
        ]
    elif mask.ndim == 3:
        mask_mode = "3d"
        mask_inputs = [(mask != 0).astype(jnp.int8)]
        mask_specs = [pl.BlockSpec((None, tq, tk), lambda b, qi, ki: (b, qi, ki))]
    else:
        raise ValueError("mask must be None, 2-D (B,N) or 3-D (B,N,N)")

    kernel = _make_flash_kernel(mask_mode, inv_scale=2.0 * float(d_k))

    out_padded = pl.pallas_call(
        kernel,
        out_shape=jax.ShapeDtypeStruct((B, N, dvp), f32),
        grid_spec=pltpu.PrefetchScalarGridSpec(
            num_scalar_prefetch=0,
            grid=(B, nq, nkv),
            in_specs=mask_specs + [qw_spec, kw_spec, vw_spec],
            out_specs=out_spec,
            scratch_shapes=[pltpu.VMEM((tq, 1), f32),      # running max
                            pltpu.VMEM((tq, 1), f32),      # running denom
                            pltpu.VMEM((tq, dvp), f32)]),  # output accumulator
        compiler_params=pltpu.CompilerParams(
            dimension_semantics=("parallel", "parallel", "arbitrary"),
            vmem_limit_bytes=_VMEM_LIMIT),
    )(*mask_inputs, QW, KW, VW)

    return out_padded[:, :, :d_v]


def init_params(key, d_model, d_k, d_v):
    """Deterministic synthetic init matching nn.Linear parameter shapes."""
    ks = jax.random.split(key, 6)
    bound = 1.0 / (d_model ** 0.5)
    Wq = jax.random.uniform(ks[0], (d_k, d_model), jnp.float32, -bound, bound)
    bq = jax.random.uniform(ks[1], (d_k,), jnp.float32, -bound, bound)
    Wk = jax.random.uniform(ks[2], (d_k, d_model), jnp.float32, -bound, bound)
    bk = jax.random.uniform(ks[3], (d_k,), jnp.float32, -bound, bound)
    Wv = jax.random.uniform(ks[4], (d_v, d_model), jnp.float32, -bound, bound)
    bv = jax.random.uniform(ks[5], (d_v,), jnp.float32, -bound, bound)
    return Wq, bq, Wk, bk, Wv, bv


def _reference(Q, K, V, params, mask):
    """Pure-JAX (f32) mirror of the PyTorch module, for validation."""
    Wq, bq, Wk, bk, Wv, bv = params
    QW = Q @ Wq.T + bq
    KW = K @ Wk.T + bk
    VW = V @ Wv.T + bv
    scores = jnp.einsum("bqd,bkd->bqk", QW, KW)
    if mask is not None:
        m3 = mask[:, :, None] * mask[:, None, :] if mask.ndim == 2 else mask
        scores = jnp.where(m3 != 0, scores, _MASK_VALUE)
    p = jax.nn.softmax(scores, axis=-1)
    d_k = Wq.shape[0]
    return jnp.einsum("bqk,bkv->bqv", p / (2.0 * d_k), VW)


if __name__ == "__main__":
    B, N, d_model, d_k, d_v = 2, 8, 32, 16, 16

    key = jax.random.PRNGKey(0)
    kq, kk, kv, kp, km = jax.random.split(key, 5)
    Q = jax.random.normal(kq, (B, N, d_model), jnp.float32)
    K = jax.random.normal(kk, (B, N, d_model), jnp.float32)
    V = jax.random.normal(kv, (B, N, d_model), jnp.float32)
    params = init_params(kp, d_model, d_k, d_v)

    pad_mask = (jax.random.uniform(km, (B, N)) > 0.3).astype(jnp.float32)
    pad_mask = pad_mask.at[:, 0].set(1.0)
    causal = jnp.tile(jnp.tril(jnp.ones((N, N), jnp.float32)), (B, 1, 1))

    for name, m in (("none", None), ("2d", pad_mask), ("3d", causal)):
        out = attention_forward(Q, K, V, params, mask=m)
        out = jax.block_until_ready(out)
        assert out.shape == (B, N, d_v), (name, out.shape)
        ref = _reference(Q, K, V, params, m)
        err = float(jnp.max(jnp.abs(out - ref)))
        # bf16 MXU operands + approx reciprocal => loosened tolerance
        assert err < 5e-2, f"mask={name}: max abs err {err}"

    print("KERNEL_OK")
</pallas_src>

<mosaic_0001>
module attributes {stable_mosaic.version = 11 : i64} {
  func.func @_projection_kernel(%arg0: i32, %arg1: memref<16x32xf32, #tpu.memory_space<vmem>>, %arg2: memref<16x32xf32, #tpu.memory_space<vmem>>, %arg3: memref<16x32xf32, #tpu.memory_space<vmem>>, %arg4: memref<32x128xbf16, #tpu.memory_space<vmem>>, %arg5: memref<1x128xf32, #tpu.memory_space<vmem>>, %arg6: memref<32x128xbf16, #tpu.memory_space<vmem>>, %arg7: memref<1x128xf32, #tpu.memory_space<vmem>>, %arg8: memref<32x128xbf16, #tpu.memory_space<vmem>>, %arg9: memref<1x128xf32, #tpu.memory_space<vmem>>, %arg10: memref<16x128xbf16, #tpu.memory_space<vmem>>, %arg11: memref<16x128xbf16, #tpu.memory_space<vmem>>, %arg12: memref<16x128xbf16, #tpu.memory_space<vmem>>) attributes {dimension_semantics = [#tpu.dimension_semantics<parallel>], iteration_bounds = array<i64: 1>, scalar_prefetch = 0 : i64, scratch_operands = 0 : i64, tpu.core_type = #tpu.core_type<tc>, window_params = [{transform_indices = @transform_0, window_bounds = array<i64: 16, 32>}, {transform_indices = @transform_1, window_bounds = array<i64: 16, 32>}, {transform_indices = @transform_2, window_bounds = array<i64: 16, 32>}, {pipeline_mode = #tpu.pipeline_mode<synchronous>, transform_indices = @transform_3, window_bounds = array<i64: 32, 128>}, {pipeline_mode = #tpu.pipeline_mode<synchronous>, transform_indices = @transform_4, window_bounds = array<i64: 1, 128>}, {pipeline_mode = #tpu.pipeline_mode<synchronous>, transform_indices = @transform_5, window_bounds = array<i64: 32, 128>}, {pipeline_mode = #tpu.pipeline_mode<synchronous>, transform_indices = @transform_6, window_bounds = array<i64: 1, 128>}, {pipeline_mode = #tpu.pipeline_mode<synchronous>, transform_indices = @transform_7, window_bounds = array<i64: 32, 128>}, {pipeline_mode = #tpu.pipeline_mode<synchronous>, transform_indices = @transform_8, window_bounds = array<i64: 1, 128>}, {transform_indices = @transform_9, window_bounds = array<i64: 16, 128>}, {transform_indices = @transform_10, window_bounds = array<i64: 16, 128>}, {transform_indices = @transform_11, window_bounds = array<i64: 16, 128>}]} {
    %c0 = arith.constant 0 : index
    %c0_0 = arith.constant 0 : index
    %0 = vector.load %arg1[%c0, %c0_0] : memref<16x32xf32, #tpu.memory_space<vmem>>, vector<16x32xf32>
    %1 = arith.truncf %0 : vector<16x32xf32> to vector<16x32xbf16>
    %c0_1 = arith.constant 0 : index
    %c0_2 = arith.constant 0 : index
    %2 = vector.load %arg4[%c0_1, %c0_2] : memref<32x128xbf16, #tpu.memory_space<vmem>>, vector<32x128xbf16>
    %cst = arith.constant dense<0.000000e+00> : vector<16x128xf32>
    %3 = tpu.matmul %1, %2, %cst {dimension_numbers = #tpu.dot_dimension_numbers<[1], [0], [0], [1], [0, 0, 1, 1], [], []>} : vector<16x32xbf16>, vector<32x128xbf16>, vector<16x128xf32> -> vector<16x128xf32>
    %c0_3 = arith.constant 0 : index
    %c0_4 = arith.constant 0 : index
    %4 = vector.load %arg5[%c0_3, %c0_4] : memref<1x128xf32, #tpu.memory_space<vmem>>, vector<1x128xf32>
    %5 = vector.broadcast %4 : vector<1x128xf32> to vector<16x128xf32>
    %6 = arith.addf %3, %5 : vector<16x128xf32>
    %7 = arith.truncf %6 : vector<16x128xf32> to vector<16x128xbf16>
    %c0_5 = arith.constant 0 : index
    %c0_6 = arith.constant 0 : index
    %8 = vector.load %arg10[%c0_5, %c0_6] : memref<16x128xbf16, #tpu.memory_space<vmem>>, vector<16x128xbf16>
    tpu.vector_store %arg10[%c0_5, %c0_6], %7 {strides = array<i32>} : memref<16x128xbf16, #tpu.memory_space<vmem>>, vector<16x128xbf16>,
    %c0_7 = arith.constant 0 : index
    %c0_8 = arith.constant 0 : index
    %9 = vector.load %arg2[%c0_7, %c0_8] : memref<16x32xf32, #tpu.memory_space<vmem>>, vector<16x32xf32>
    %10 = arith.truncf %9 : vector<16x32xf32> to vector<16x32xbf16>
    %c0_9 = arith.constant 0 : index
    %c0_10 = arith.constant 0 : index
    %11 = vector.load %arg6[%c0_9, %c0_10] : memref<32x128xbf16, #tpu.memory_space<vmem>>, vector<32x128xbf16>
    %cst_11 = arith.constant dense<0.000000e+00> : vector<16x128xf32>
    %12 = tpu.matmul %10, %11, %cst_11 {dimension_numbers = #tpu.dot_dimension_numbers<[1], [0], [0], [1], [0, 0, 1, 1], [], []>} : vector<16x32xbf16>, vector<32x128xbf16>, vector<16x128xf32> -> vector<16x128xf32>
    %c0_12 = arith.constant 0 : index
    %c0_13 = arith.constant 0 : index
    %13 = vector.load %arg7[%c0_12, %c0_13] : memref<1x128xf32, #tpu.memory_space<vmem>>, vector<1x128xf32>
    %14 = vector.broadcast %13 : vector<1x128xf32> to vector<16x128xf32>
    %15 = arith.addf %12, %14 : vector<16x128xf32>
    %16 = arith.truncf %15 : vector<16x128xf32> to vector<16x128xbf16>
    %c0_14 = arith.constant 0 : index
    %c0_15 = arith.constant 0 : index
    %17 = vector.load %arg11[%c0_14, %c0_15] : memref<16x128xbf16, #tpu.memory_space<vmem>>, vector<16x128xbf16>
    tpu.vector_store %arg11[%c0_14, %c0_15], %16 {strides = array<i32>} : memref<16x128xbf16, #tpu.memory_space<vmem>>, vector<16x128xbf16>,
    %c0_16 = arith.constant 0 : index
    %c0_17 = arith.constant 0 : index
    %18 = vector.load %arg3[%c0_16, %c0_17] : memref<16x32xf32, #tpu.memory_space<vmem>>, vector<16x32xf32>
    %19 = arith.truncf %18 : vector<16x32xf32> to vector<16x32xbf16>
    %c0_18 = arith.constant 0 : index
    %c0_19 = arith.constant 0 : index
    %20 = vector.load %arg8[%c0_18, %c0_19] : memref<32x128xbf16, #tpu.memory_space<vmem>>, vector<32x128xbf16>
    %cst_20 = arith.constant dense<0.000000e+00> : vector<16x128xf32>
    %21 = tpu.matmul %19, %20, %cst_20 {dimension_numbers = #tpu.dot_dimension_numbers<[1], [0], [0], [1], [0, 0, 1, 1], [], []>} : vector<16x32xbf16>, vector<32x128xbf16>, vector<16x128xf32> -> vector<16x128xf32>
    %c0_21 = arith.constant 0 : index
    %c0_22 = arith.constant 0 : index
    %22 = vector.load %arg9[%c0_21, %c0_22] : memref<1x128xf32, #tpu.memory_space<vmem>>, vector<1x128xf32>
    %23 = vector.broadcast %22 : vector<1x128xf32> to vector<16x128xf32>
    %24 = arith.addf %21, %23 : vector<16x128xf32>
    %25 = arith.truncf %24 : vector<16x128xf32> to vector<16x128xbf16>
    %c0_23 = arith.constant 0 : index
    %c0_24 = arith.constant 0 : index
    %26 = vector.load %arg12[%c0_23, %c0_24] : memref<16x128xbf16, #tpu.memory_space<vmem>>, vector<16x128xbf16>
    tpu.vector_store %arg12[%c0_23, %c0_24], %25 {strides = array<i32>} : memref<16x128xbf16, #tpu.memory_space<vmem>>, vector<16x128xbf16>,
    return
  }
  func.func @transform_0(%arg0: i32) -> (i32, i32) {
    %c0_i32 = arith.constant 0 : i32
    %c0_i32_0 = arith.constant 0 : i32
    return %arg0, %c0_i32 : i32, i32
  }
  func.func @transform_1(%arg0: i32) -> (i32, i32) {
    %c0_i32 = arith.constant 0 : i32
    %c0_i32_0 = arith.constant 0 : i32
    return %arg0, %c0_i32 : i32, i32
  }
  func.func @transform_2(%arg0: i32) -> (i32, i32) {
    %c0_i32 = arith.constant 0 : i32
    %c0_i32_0 = arith.constant 0 : i32
    return %arg0, %c0_i32 : i32, i32
  }
  func.func @transform_3(%arg0: i32) -> (i32, i32) {
    %c0_i32 = arith.constant 0 : i32
    %c0_i32_0 = arith.constant 0 : i32
    %c0_i32_1 = arith.constant 0 : i32
    return %c0_i32, %c0_i32_0 : i32, i32
  }
  func.func @transform_4(%arg0: i32) -> (i32, i32) {
    %c0_i32 = arith.constant 0 : i32
    %c0_i32_0 = arith.constant 0 : i32
    %c0_i32_1 = arith.constant 0 : i32
    return %c0_i32, %c0_i32_0 : i32, i32
  }
  func.func @transform_5(%arg0: i32) -> (i32, i32) {
    %c0_i32 = arith.constant 0 : i32
    %c0_i32_0 = arith.constant 0 : i32
    %c0_i32_1 = arith.constant 0 : i32
    return %c0_i32, %c0_i32_0 : i32, i32
  }
  func.func @transform_6(%arg0: i32) -> (i32, i32) {
    %c0_i32 = arith.constant 0 : i32
    %c0_i32_0 = arith.constant 0 : i32
    %c0_i32_1 = arith.constant 0 : i32
    return %c0_i32, %c0_i32_0 : i32, i32
  }
  func.func @transform_7(%arg0: i32) -> (i32, i32) {
    %c0_i32 = arith.constant 0 : i32
    %c0_i32_0 = arith.constant 0 : i32
    %c0_i32_1 = arith.constant 0 : i32
    return %c0_i32, %c0_i32_0 : i32, i32
  }
  func.func @transform_8(%arg0: i32) -> (i32, i32) {
    %c0_i32 = arith.constant 0 : i32
    %c0_i32_0 = arith.constant 0 : i32
    %c0_i32_1 = arith.constant 0 : i32
    return %c0_i32, %c0_i32_0 : i32, i32
  }
  func.func @transform_9(%arg0: i32) -> (i32, i32) {
    %c0_i32 = arith.constant 0 : i32
    %c0_i32_0 = arith.constant 0 : i32
    return %arg0, %c0_i32 : i32, i32
  }
  func.func @transform_10(%arg0: i32) -> (i32, i32) {
    %c0_i32 = arith.constant 0 : i32
    %c0_i32_0 = arith.constant 0 : i32
    return %arg0, %c0_i32 : i32, i32
  }
  func.func @transform_11(%arg0: i32) -> (i32, i32) {
    %c0_i32 = arith.constant 0 : i32
    %c0_i32_0 = arith.constant 0 : i32
    return %arg0, %c0_i32 : i32, i32
  }
}

</mosaic_0001>

<bundles_post_ra>
// kernel: tpu_custom_call.1
= control target key start
LH: loop header
LB: loop body
LE: loop exit
PB: predicated region body
PF: predicated region fallthrough
CT: control target
= control target key end

     0   :  { %17 = vsyncpa [#allocation3], 0  ;;  %s838_s0 = inlined_call_operand.hbm [shape: f32[16,32], index: 0, kind: input, shape index: {}]   ;;  %s839_s1 = inlined_call_operand.hbm [shape: f32[16,32], index: 1, kind: input, shape index: {}]   ;;  %s840_s2 = inlined_call_operand.hbm [shape: f32[16,32], index: 2, kind: input, shape index: {}]   ;;  %s841_s3 = inlined_call_operand.hbm [shape: bf16[32,128], index: 3, kind: input, shape index: {}]   ;;  %s842_s4 = inlined_call_operand.vmem [shape: f32[1,128], index: 4, kind: input, shape index: {}]   ;;  %s843_s5 = inlined_call_operand.hbm [shape: bf16[32,128], index: 5, kind: input, shape index: {}]   ;;  %s844_s6 = inlined_call_operand.vmem [shape: f32[1,128], index: 6, kind: input, shape index: {}]   ;;  %s845_s7 = inlined_call_operand.hbm [shape: bf16[32,128], index: 7, kind: input, shape index: {}]   ;;  %s846_s8 = inlined_call_operand.vmem [shape: f32[1,128], index: 8, kind: input, shape index: {}]   ;;  %s847_s9 = inlined_call_operand.hbm [shape: bf16[16,128], index: 9, kind: output, shape index: {0}]   ;;  %s848_s10 = inlined_call_operand.hbm [shape: bf16[16,128], index: 10, kind: output, shape index: {1}]   ;;  %s849_s11 = inlined_call_operand.hbm [shape: bf16[16,128], index: 11, kind: output, shape index: {2}]  }
   0x1   :  { %18 = vsyncpa [#allocation6], 0 }
   0x2   :  { %19 = vsyncpa [#allocation9], 0 }
   0x3   :  { %20 = vsyncpa [#allocation12], 0 }
   0x4   :  { %21 = vsyncpa [#allocation4], 0 }
   0x5   :  { %22 = vsyncpa [#allocation15], 0  ;;  %s697_s17 = smov [#allocation5]   ;;  %s698_s19 = smov [#allocation8]  }
   0x6   :  { %s40_s18 = sshll.u32 %s697_s17, 4  ;;  %s64_s20 = sshll.u32 %s698_s19, 4  ;;  %s41_s18 = int_to_ptr.vmem [resolvable:$true] %s40_s18  ;;  %s65_s20 = int_to_ptr.vmem [resolvable:$true] %s64_s20 }
   0x7   :  { %s513_s21 = scalar_lea.vmem %s41_s18, 256  ;;  %p518_p1 = scmp.lt.s32.totalorder %s41_s18, %s41_s18 }
   0x8   :  { %p514_p0 = scmp.ne.s32.totalorder %s41_s18, %s513_s21  ;;  %p519_p2 = scmp.lt.s32.totalorder %s513_s21, %s513_s21 }
   0xa   :  { %p520_p3 = por %p519_p2, %p518_p1 }
   0xc   :  { %p521_p4 = pnand %p520_p3, %p514_p0 }
   0xe   :  { %524 = shalt.err (!%p521_p4)
}
   0xf   :  { %s699_s22 = smov 128   ;;  %s700_s23 = smov 8  }
  0x10   :  { %46 = dma.hbm_to_vmem [thread:$0]  %s839_s1, 256, %s41_s18, [#allocation6], %s699_s22, %s699_s22, %s700_s23  }
  0x11   :  { %s533_s26 = scalar_lea.vmem %s65_s20, 256  ;;  %p538_p6 = scmp.lt.s32.totalorder %s65_s20, %s65_s20 }
  0x12   :  { %p534_p5 = scmp.ne.s32.totalorder %s65_s20, %s533_s26  ;;  %p539_p7 = scmp.lt.s32.totalorder %s533_s26, %s533_s26 }
  0x14   :  { %p540_p8 = por %p539_p7, %p538_p6 }
  0x16   :  { %p541_p9 = pnand %p540_p8, %p534_p5 }
  0x18   :  { %544 = shalt.err (!%p541_p9)
}
  0x19   :  { %s701_s27 = smov 64   ;;  %s702_s28 = smov 4  }
  0x1a   :  { %70 = dma.hbm_to_vmem [thread:$0]  %s841_s3, 256, %s65_s20, [#allocation9], %s701_s27, %s701_s27, %s702_s28  }
  0x1b   :  { %s703_s12 = smov [#allocation2]   ;;  %s704_s14 = smov [#allocation7]  }
  0x1c   :  { %s28_s13 = sshll.u32 %s703_s12, 4  ;;  %s52_s1 = sshll.u32 %s704_s14, 4  ;;  %s29_s13 = int_to_ptr.vmem [resolvable:$true] %s28_s13  ;;  %s53_s1 = int_to_ptr.vmem [resolvable:$true] %s52_s1 }
  0x1d   :  { %s553_s15 = scalar_lea.vmem %s29_s13, 256  ;;  %p558_p11 = scmp.lt.s32.totalorder %s29_s13, %s29_s13 }
  0x1e   :  { %p554_p10 = scmp.ne.s32.totalorder %s29_s13, %s553_s15  ;;  %p559_p12 = scmp.lt.s32.totalorder %s553_s15, %s553_s15 }
  0x20   :  { %p560_p13 = por %p559_p12, %p558_p11 }
  0x22   :  { %p561_p0 = pnand %p560_p13, %p554_p10 }
  0x24   :  { %564 = shalt.err (!%p561_p0)
}
  0x25   :  { %34 = dma.hbm_to_vmem [thread:$0]  %s838_s0, 256, %s29_s13, [#allocation3], %s699_s22, %s699_s22, %s700_s23  }
  0x26   :  { %s573_s3 = scalar_lea.vmem %s53_s1, 256  ;;  %p578_p2 = scmp.lt.s32.totalorder %s53_s1, %s53_s1 }
  0x27   :  { %p574_p1 = scmp.ne.s32.totalorder %s53_s1, %s573_s3  ;;  %p579_p3 = scmp.lt.s32.totalorder %s573_s3, %s573_s3 }
  0x29   :  { %p580_p4 = por %p579_p3, %p578_p2 }
  0x2b   :  { %p581_p5 = pnand %p580_p4, %p574_p1 }
  0x2d   :  { %584 = shalt.err (!%p581_p5)
}
  0x2e   :  { %58 = dma.hbm_to_vmem [thread:$0]  %s840_s2, 256, %s53_s1, [#allocation6], %s699_s22, %s699_s22, %s700_s23  }
  0x2f   :  { %s705_s20 = smov [#allocation10]   ;;  %s706_s24 = smov [#allocation11]  }
  0x30   :  { %s78_s21 = sshll.u32 %s705_s20, 4  ;;  %s92_s25 = sshll.u32 %s706_s24, 4  ;;  %s79_s21 = int_to_ptr.vmem [resolvable:$true] %s78_s21  ;;  %s93_s25 = int_to_ptr.vmem [resolvable:$true] %s92_s25 }
  0x31   :  { %s593_s0 = scalar_lea.vmem %s79_s21, 256  ;;  %p598_p7 = scmp.lt.s32.totalorder %s79_s21, %s79_s21 }
  0x32   :  { %p594_p6 = scmp.ne.s32.totalorder %s79_s21, %s593_s0  ;;  %p599_p8 = scmp.lt.s32.totalorder %s593_s0, %s593_s0 }
  0x34   :  { %p600_p9 = por %p599_p8, %p598_p7 }
  0x36   :  { %p601_p10 = pnand %p600_p9, %p594_p6 }
  0x38   :  { %604 = shalt.err (!%p601_p10)
}
  0x39   :  { %84 = dma.hbm_to_vmem [thread:$0]  %s843_s5, 256, %s79_s21, [#allocation9], %s701_s27, %s701_s27, %s702_s28  }
  0x3a   :  { %s613_s2 = scalar_lea.vmem %s93_s25, 256  ;;  %p618_p12 = scmp.lt.s32.totalorder %s93_s25, %s93_s25 }
  0x3b   :  { %p614_p11 = scmp.ne.s32.totalorder %s93_s25, %s613_s2  ;;  %p619_p13 = scmp.lt.s32.totalorder %s613_s2, %s613_s2 }
  0x3d   :  { %p620_p0 = por %p619_p13, %p618_p12 }
  0x3f   :  { %p621_p1 = pnand %p620_p0, %p614_p11 }
  0x41   :  { %624 = shalt.err (!%p621_p1)
}
  0x42   :  { %98 = dma.hbm_to_vmem [thread:$0]  %s845_s7, 256, %s93_s25, [#allocation12], %s701_s27, %s701_s27, %s702_s28  }
  0x43   :  { %685 = dma.done.wait [#allocation3], 256  }
  0x44   :  { %686 = vsyncadd [#allocation3], 4294967040 }
  0x45   :  { %687 = dma.done.wait [#allocation6], 512  }
  0x46   :  { %688 = vsyncadd [#allocation6], 4294966784 }
  0x47   :  { %689 = dma.done.wait [#allocation9], 512  }
  0x48   :  { %690 = vsyncadd [#allocation9], 4294966784 }
  0x49   :  { %691 = dma.done.wait [#allocation12], 256  }
  0x4a   :  { %692 = vsyncadd [#allocation12], 4294967040  ;;  %v707_v0 = vmov 0.0   ;;  %vm708_vm0 = vmmov 0   ;;  %v499_v1 = vld [vmem:[#allocation8 + $0x8] sm:$0xff]   ;;  %v500_v2 = vld [vmem:[#allocation10 + $0x8] sm:$0xff]  }
  0x4b   :  { %460 = vmatprep.subr.bf16.mxu0 %v707_v0  ;;  %468 = vmatprep.subr.bf16.mxu1 %v707_v0  ;;  %v501_v3 = vld [vmem:[#allocation8] sm:$0xff]   ;;  %v502_v4 = vld [vmem:[#allocation10] sm:$0xff]   ;;  %v121_v6 = vld [vmem:[#allocation2 + $0x8] sm:$0xff]  ;;  %vm146_vm1 = vcmask 261120   ;;  %s709_s13 = smov [#allocation13]   ;;  %s710_s1 = smov [#allocation14]  }
  0x4c   :  { %464 = vmatprep.mubr.msk.bf16.mxu0 %vm708_vm0, %v707_v0  ;;  %472 = vmatprep.mubr.msk.bf16.mxu1 %vm708_vm0, %v707_v0  ;;  %v120_v5 = vld [vmem:[#allocation2] sm:$0xff]  ;;  %v503_v8 = vld [vmem:[#allocation11 + $0x8] sm:$0xff]   ;;  %v201_v9 = vld [vmem:[#allocation5] sm:$0xff]  ;;  %s366_s14 = sshll.u32 %s709_s13, 4  ;;  %s378_s15 = sshll.u32 %s710_s1, 4  ;;  %s367_s14 = int_to_ptr.vmem [resolvable:$true] %s366_s14  ;;  %s379_s15 = int_to_ptr.vmem [resolvable:$true] %s378_s15 }
  0x4d   :  { %461 = vmatpush3.bf16.msra.mxu0 %v499_v1  ;;  %469 = vmatpush3.bf16.msra.mxu1 %v500_v2  ;;  %v122_v7 = vpack.c.bf16 %v121_v6, %v120_v5  ;;  %v202_v10 = vld [vmem:[#allocation5 + $0x8] sm:$0xff]  ;;  %v504_v12 = vld [vmem:[#allocation11] sm:$0xff]   ;;  %v281_v13 = vld [vmem:[#allocation7] sm:$0xff]  ;;  %s625_s16 = scalar_lea.vmem %s367_s14, 128  ;;  %p630_p3 = scmp.lt.s32.totalorder %s367_s14, %s367_s14 }
  0x4e   :  { %462 = vmatprep.subr.bf16.mxu0 %v707_v0  ;;  %470 = vmatprep.subr.bf16.mxu1 %v707_v0  ;;  %v203_v11 = vpack.c.bf16 %v202_v10, %v201_v9  ;;  %v282_v14 = vld [vmem:[#allocation7 + $0x8] sm:$0xff]  ;;  %v418_v17 = vld [vmem:[%s844_s6] ss:$0 sm:$0xff]  ;;  %p626_p2 = scmp.ne.s32.totalorder %s367_s14, %s625_s16  ;;  %p631_p4 = scmp.lt.s32.totalorder %s625_s16, %s625_s16 }
  0x4f   :  { %v283_v15 = vpack.c.bf16 %v282_v14, %v281_v13  ;;  %v412_v19 = vld [vmem:[%s842_s4] ss:$0 sm:$0xff] }
  0x50   :  { %v424_v33 = vld [vmem:[%s846_s8] ss:$0 sm:$0xff]  ;;  %p632_p5 = por %p631_p4, %p630_p3 }
  0x51   :  { %463 = vmatpush3.bf16.msra.mxu0 %v501_v3  ;;  %471 = vmatpush3.bf16.msra.mxu1 %v502_v4 }
  0x52   :  { %476 = vmatprep.subr.bf16.mxu0 %v707_v0  ;;  %p633_p6 = pnand %p632_p5, %p626_p2 }
  0x54   :  { %465 = vmatmul.mubr.msk.bf16.vlgmr.msra.gmra.mxu0 %vm146_vm1, %v122_v7  ;;  %473 = vmatmul.mubr.msk.bf16.vlgmr.msra.gmra.mxu1 %vm146_vm1, %v203_v11 }
  0x55   :  { %477 = vmatpush3.bf16.msra.mxu0 %v503_v8  ;;  %480 = vmatprep.mubr.msk.bf16.mxu0 %vm708_vm0, %v707_v0 }
  0x56   :  { %478 = vmatprep.subr.bf16.mxu0 %v707_v0 }
  0x59   :  { %479 = vmatpush3.bf16.msra.mxu0 %v504_v12 }
  0x5c   :  { %481 = vmatmul.mubr.msk.bf16.vlgmr.msra.gmra.mxu0 %vm146_vm1, %v283_v15 }
 0x114   :  { %v184_v16 = vpop.f32.mrf.mxu0  ;;  %v264_v18 = vpop.f32.mrf.mxu1 }
 0x115   :  { %v265_v22 = vadd.f32 %v418_v17, %v264_v18  ;;  %v185_v24 = vadd.f32 %v412_v19, %v184_v16 }
 0x116   :  { %v466_v20 = vpop.f32.mrf.mxu0  ;;  %v474_v21 = vpop.f32.mrf.mxu1 }
 0x118   :  { %v187_v23 = vpop.f32.mrf.mxu0  ;;  %v267_v26 = vpop.f32.mrf.mxu1 }
 0x119   :  { %v188_v25 = vadd.f32 %v412_v19, %v187_v23  ;;  %v268_v28 = vadd.f32 %v418_v17, %v267_v26 }
 0x11a   :  { %v467_v27 = vpop.f32.mrf.mxu0  ;;  %v475_v30 = vpop.f32.mrf.mxu1 }
 0x11b   :  { %v439_v29 = vpack.c.bf16 %v188_v25, %v185_v24  ;;  %v444_v31 = vpack.c.bf16 %v268_v28, %v265_v22 }
 0x11c   :  { %v344_v32 = vpop.f32.mrf.mxu0 }
 0x11d   :  { %440 = vst [vmem:[#allocation13] sm:$0xff] %v439_v29   ;;  %445 = vst [vmem:[#allocation14] sm:$0xff] %v444_v31  }
 0x11e   :  { %v482_v34 = vpop.f32.mrf.mxu0 }
 0x11f   :  { %636 = shalt.err (!%p633_p6)
}
 0x120   :  { %372 = dma.vmem_to_hbm [thread:$0]  %s367_s14, 128, %s847_s9, [#allocation4], %s701_s27, %s701_s27, %s702_s28  }
 0x121   :  { %s645_s18 = scalar_lea.vmem %s379_s15, 128  ;;  %p650_p8 = scmp.lt.s32.totalorder %s379_s15, %s379_s15 }
 0x122   :  { %p646_p7 = scmp.ne.s32.totalorder %s379_s15, %s645_s18  ;;  %p651_p9 = scmp.lt.s32.totalorder %s645_s18, %s645_s18 }
 0x124   :  { %p652_p10 = por %p651_p9, %p650_p8 }
 0x126   :  { %p653_p11 = pnand %p652_p10, %p646_p7 }
 0x128   :  { %656 = shalt.err (!%p653_p11)
}
 0x129   :  { %384 = dma.vmem_to_hbm [thread:$0]  %s379_s15, 128, %s848_s10, [#allocation15], %s701_s27, %s701_s27, %s702_s28   ;;  %v347_v35 = vpop.f32.mrf.mxu0  ;;  %v345_v36 = vadd.f32 %v424_v33, %v344_v32 }
 0x12a   :  { %s711_s20 = smov [#allocation16]   ;;  %v348_v37 = vadd.f32 %v424_v33, %v347_v35 }
 0x12b   :  { %s390_s21 = sshll.u32 %s711_s20, 4  ;;  %v483_v38 = vpop.f32.mrf.mxu0  ;;  %s391_s21 = int_to_ptr.vmem [resolvable:$true] %s390_s21 }
 0x12c   :  { %v449_v39 = vpack.c.bf16 %v348_v37, %v345_v36  ;;  %s665_s9 = scalar_lea.vmem %s391_s21, 128  ;;  %p670_p13 = scmp.lt.s32.totalorder %s391_s21, %s391_s21 }
 0x12d   :  { %p666_p12 = scmp.ne.s32.totalorder %s391_s21, %s665_s9  ;;  %p671_p0 = scmp.lt.s32.totalorder %s665_s9, %s665_s9 }
 0x12e   :  { %450 = vst [vmem:[#allocation16] sm:$0xff] %v449_v39  }
 0x12f   :  { %p672_p1 = por %p671_p0, %p670_p13 }
 0x131   :  { %p673_p2 = pnand %p672_p1, %p666_p12 }
 0x133   :  { %676 = shalt.err (!%p673_p2)
}
 0x134   :  { %396 = dma.vmem_to_hbm [thread:$0]  %s391_s21, 128, %s849_s11, [#allocation15], %s701_s27, %s701_s27, %s702_s28  }
 0x135   :  { %693 = dma.done.wait [#allocation4], 128  }
 0x136   :  { %694 = vsyncadd [#allocation4], 4294967168 }
 0x137   :  { %695 = dma.done.wait [#allocation15], 256  }
 0x138   :  { %696 = vsyncadd [#allocation15], 4294967040 }
 0x139   :  { %406 = vsyncpa [#allocation3], 1 }
 0x13a   :  { %407 = vsyncpa [#allocation6], 1 }
 0x13b   :  { %408 = vsyncpa [#allocation9], 1 }
 0x13c   :  { %409 = vsyncpa [#allocation12], 1 }
 0x13d   :  { %410 = vsyncpa [#allocation4], 1 }
 0x13e   :  { %411 = vsyncpa [#allocation15], 1 }

</bundles_post_ra>
